<compile_context>
chip_gen: v5e
topology: v5e:2x2
jax: 0.10.0
libtpu: 0.0.40
codegen_flags: <defaults>
</compile_context>

<pallas_src>
import functools
import math

import jax
import jax.numpy as jnp
from jax.experimental import pallas as pl
from jax.experimental.pallas import tpu as pltpu


# ----------------------------------------------------------------------------
# Small helpers
# ----------------------------------------------------------------------------
def _round_up(v, m):
    return ((v + m - 1) // m) * m


def _pow2_floor(v):
    p = 1
    while p * 2 <= v:
        p *= 2
    return p


def _vmem_limit_bytes():
    # Generation-aware VMEM budget (v5e/v6e: 128 MiB, v7x: 64 MiB per TC),
    # leaving headroom for Mosaic internal scratch and output double buffers.
    try:
        cap = int(pltpu.get_tpu_info().vmem_capacity_bytes)
    except Exception:
        cap = 64 * 1024 * 1024
    return max(32 * 1024 * 1024, cap - 24 * 1024 * 1024)


_VMEM_LIMIT = _vmem_limit_bytes()


def _pick_tiles(n, row_tile, src_tile):
    """Power-of-two destination / source tiles + padded node count.

    Power-of-two tiles guarantee that padding to max(tq, tk) keeps both grid
    axes evenly divisible; tq >= 32 keeps the int8 adjacency tile comfortably
    aligned with packed sublane layout."""
    tq = max(32, _pow2_floor(max(32, min(row_tile, n))))
    tk = 0 if n <= src_tile else max(128, _pow2_floor(src_tile))
    n_pad = _round_up(n, max(tq, tk) if tk else tq)
    if tk == 0:
        tk = n_pad                       # whole (padded) source side in one tile
    tq = min(tq, n_pad)
    return n_pad, tq, tk


# ----------------------------------------------------------------------------
# Kernels
# ----------------------------------------------------------------------------
def gat_project_kernel(h_ref, w_ref, asrc_ref, adst_ref, z_ref, el_ref, er_ref,
                       *, use_bf16):
    """Per node-row tile: z = h @ W (all heads at once) plus the folded
    attention scalars el (source term) and er (destination term)."""
    cdt = jnp.bfloat16 if use_bf16 else jnp.float32
    h = h_ref[...].astype(cdt)
    z = jnp.dot(h, w_ref[...].astype(cdt), preferred_element_type=jnp.float32)
    z_ref[...] = z.astype(z_ref.dtype)
    el_ref[...] = jnp.dot(h, asrc_ref[...].astype(cdt),
                          preferred_element_type=jnp.float32)     # [tq, H]
    er_ref[...] = jnp.dot(h, adst_ref[...].astype(cdt),
                          preferred_element_type=jnp.float32)     # [tq, H]


def gat_attend_kernel(z_ref, elt_ref, er_ref, adj_ref, o_ref,
                      m_ref, l_ref, acc_ref, *, n_heads, f_out,
                      negative_slope, apply_act, use_bf16):
    """Online-softmax GAT aggregation over one (dst-tile, src-tile) pair.

    z_ref:   [tk, H*F]  bf16/f32 projected source features
    elt_ref: [H, tk]    f32 source attention term (transposed)
    er_ref:  [tq, H]    f32 destination attention term
    adj_ref: [tq, tk]   int8 adjacency mask tile
    o_ref:   [tq, H*F]  output (written once at the last src step)
    scratch: m [tq,H], l [tq,H], acc [tq,H*F]  (f32, resident over src axis)
    """
    j = pl.program_id(1)

    @pl.when(j == 0)
    def _init():
        m_ref[...] = jnp.full_like(m_ref, -1e30)
        l_ref[...] = jnp.zeros_like(l_ref)
        acc_ref[...] = jnp.zeros_like(acc_ref)

    cdt = jnp.bfloat16 if use_bf16 else jnp.float32
    z = z_ref[...]
    elt = elt_ref[...]
    er = er_ref[...]
    edge = adj_ref[...] > 0
    neg = jnp.float32(-1e30)

    m_old = m_ref[...]
    l_old = l_ref[...]
    acc_old = acc_ref[...]

    tq = er.shape[0]
    m_cols, a_cols, ps_cols, pv_cols = [], [], [], []
    for hd in range(n_heads):
        s = er[:, hd:hd + 1] + elt[hd:hd + 1, :]                  # [tq, tk]
        s = jnp.where(s > 0, s, negative_slope * s)               # LeakyReLU
        s = jnp.where(edge, s, neg)                               # mask non-edges
        m_h = jnp.maximum(m_old[:, hd:hd + 1],
                          jnp.max(s, axis=-1, keepdims=True))
        a_h = jnp.exp(m_old[:, hd:hd + 1] - m_h)
        p = jnp.exp(s - m_h)                     # masked lanes underflow to 0
        ps = jnp.sum(p, axis=-1, keepdims=True)
        zh = z[:, hd * f_out:(hd + 1) * f_out]
        pv = jnp.dot(p.astype(cdt), zh.astype(cdt),
                     preferred_element_type=jnp.float32)          # [tq, F]
        m_cols.append(m_h); a_cols.append(a_h)
        ps_cols.append(ps); pv_cols.append(pv)

    # lane-dense scratch updates (single store each, no per-head masked stores)
    m_ref[...] = jnp.concatenate(m_cols, axis=-1)
    a = jnp.concatenate(a_cols, axis=-1)                          # [tq, H]
    l_ref[...] = a * l_old + jnp.concatenate(ps_cols, axis=-1)
    a_full = jnp.concatenate(
        [jnp.broadcast_to(a_cols[hd], (tq, f_out)) for hd in range(n_heads)],
        axis=-1)                                                  # [tq, H*F]
    acc_ref[...] = a_full * acc_old + jnp.concatenate(pv_cols, axis=-1)

    @pl.when(j == pl.num_programs(1) - 1)
    def _finalize():
        l = jnp.maximum(l_ref[...], 1e-9)
        inv = pl.reciprocal(l, approx=True)                       # EUP divide
        inv_full = jnp.concatenate(
            [jnp.broadcast_to(inv[:, hd:hd + 1], (tq, f_out))
             for hd in range(n_heads)], axis=-1)
        out = acc_ref[...] * inv_full
        if apply_act:
            out = jnp.maximum(out, 0.0)                           # relu
        o_ref[...] = out.astype(o_ref.dtype)                      # one lane-dense store


def sce_loss_kernel(x_ref, y_ref, o_ref, *, alpha):
    x = x_ref[...]
    y = y_ref[...]
    xn = x * jax.lax.rsqrt(jnp.maximum(jnp.sum(x * x, axis=-1, keepdims=True), 1e-24))
    yn = y * jax.lax.rsqrt(jnp.maximum(jnp.sum(y * y, axis=-1, keepdims=True), 1e-24))
    cos = jnp.sum(xn * yn, axis=-1, keepdims=True)
    loss = jnp.mean((1.0 - cos) ** alpha)
    o_ref[...] = jnp.broadcast_to(loss, (1, 1))


def edge_bce_kernel(src_ref, dst_ref, w1a_ref, w1b_ref, b1_ref, w2_ref, b2_ref,
                    y_ref, o_ref, *, negative_slope, n_rows, use_bf16):
    """Edge-recon MLP + BCE-with-logits over one pair tile; src/dst features
    are kept separate (w1 split in half) so the concatenated pair matrix is
    never materialized.  Accumulates the mean into a resident (1,1) output."""
    @pl.when(pl.program_id(0) == 0)
    def _init():
        o_ref[...] = jnp.zeros_like(o_ref)

    cdt = jnp.bfloat16 if use_bf16 else jnp.float32
    s = src_ref[...].astype(cdt)
    d = dst_ref[...].astype(cdt)
    h = (jnp.dot(s, w1a_ref[...].astype(cdt), preferred_element_type=jnp.float32)
         + jnp.dot(d, w1b_ref[...].astype(cdt), preferred_element_type=jnp.float32)
         + b1_ref[...])
    h = jnp.where(h > 0, h, negative_slope * h)                   # LeakyReLU
    logit = jnp.dot(h.astype(cdt), w2_ref[...].astype(cdt),
                    preferred_element_type=jnp.float32) + b2_ref[...]
    y = y_ref[...]
    # numerically stable BCE-with-logits == Sigmoid + BCELoss
    bce = (jnp.maximum(logit, 0.0) - logit * y
           + jnp.log(1.0 + jnp.exp(-jnp.abs(logit))))
    tp = src_ref.shape[0]
    rid = pl.program_id(0) * tp + jax.lax.broadcasted_iota(jnp.int32, (tp, 1), 0)
    bce = jnp.where(rid < n_rows, bce, 0.0)                       # padded rows
    o_ref[...] = o_ref[...] + jnp.sum(bce) * (1.0 / n_rows)


# ----------------------------------------------------------------------------
# Wrappers
# ----------------------------------------------------------------------------
def fold_attn_cols(w, a_src, a_dst, n_heads, f_out):
    """Fold per-head attention vectors into the projection weights:
    columns of the returned [F_in, H] matrices are W_h @ a_h (exact algebra)."""
    f_in = w.shape[0]
    w3 = w.reshape(f_in, n_heads, f_out)
    a_src_k = jnp.einsum('khf,hf->kh', w3, a_src)
    a_dst_k = jnp.einsum('khf,hf->kh', w3, a_dst)
    return a_src_k, a_dst_k


def gat_project(h, w, a_src_k, a_dst_k, *, tq, use_bf16):
    n_pad, f_in = h.shape
    hf = w.shape[1]
    n_heads = a_src_k.shape[1]
    z_dt = jnp.bfloat16 if use_bf16 else jnp.float32
    kernel = functools.partial(gat_project_kernel, use_bf16=use_bf16)
    return pl.pallas_call(
        kernel,
        out_shape=(jax.ShapeDtypeStruct((n_pad, hf), z_dt),
                   jax.ShapeDtypeStruct((n_pad, n_heads), jnp.float32),
                   jax.ShapeDtypeStruct((n_pad, n_heads), jnp.float32)),
        grid=(n_pad // tq,),
        in_specs=[pl.BlockSpec((tq, f_in), lambda i: (i, 0)),
                  pl.BlockSpec(w.shape, lambda i: (0, 0)),
                  pl.BlockSpec(a_src_k.shape, lambda i: (0, 0)),
                  pl.BlockSpec(a_dst_k.shape, lambda i: (0, 0))],
        out_specs=(pl.BlockSpec((tq, hf), lambda i: (i, 0)),
                   pl.BlockSpec((tq, n_heads), lambda i: (i, 0)),
                   pl.BlockSpec((tq, n_heads), lambda i: (i, 0))),
        compiler_params=pltpu.CompilerParams(
            dimension_semantics=("parallel",), vmem_limit_bytes=_VMEM_LIMIT),
    )(h, w, a_src_k, a_dst_k)


def gat_attend(z, el_t, er, adj, *, n_heads, f_out, negative_slope, apply_act,
               tq, tk, use_bf16, out_dtype):
    n_pad = z.shape[0]
    hf = n_heads * f_out
    kernel = functools.partial(
        gat_attend_kernel, n_heads=n_heads, f_out=f_out,
        negative_slope=negative_slope, apply_act=apply_act, use_bf16=use_bf16)
    return pl.pallas_call(
        kernel,
        out_shape=jax.ShapeDtypeStruct((n_pad, hf), out_dtype),
        grid=(n_pad // tq, n_pad // tk),
        in_specs=[
            pl.BlockSpec((tk, hf), lambda i, j: (j, 0)),        # z (src tile)
            pl.BlockSpec((n_heads, tk), lambda i, j: (0, j)),   # el^T (src tile)
            pl.BlockSpec((tq, n_heads), lambda i, j: (i, 0)),   # er (dst tile)
            pl.BlockSpec((tq, tk), lambda i, j: (i, j)),        # int8 adjacency
        ],
        out_specs=pl.BlockSpec((tq, hf), lambda i, j: (i, 0)),  # resident over j
        scratch_shapes=[pltpu.VMEM((tq, n_heads), jnp.float32),   # running max
                        pltpu.VMEM((tq, n_heads), jnp.float32),   # denom
                        pltpu.VMEM((tq, hf), jnp.float32)],       # accumulator
        compiler_params=pltpu.CompilerParams(
            dimension_semantics=("parallel", "arbitrary"),
            vmem_limit_bytes=_VMEM_LIMIT),
    )(z, el_t, er, adj)


def gat_layer(h, adj_i8, w, a_src_k, a_dst_k, *, n_heads, f_out, negative_slope,
              apply_act, tq, tk, use_bf16, out_dtype):
    # 1) hoisted projection pass (z, el, er computed once per layer)
    z, el, er = gat_project(h, w, a_src_k, a_dst_k, tq=tq, use_bf16=use_bf16)
    # tiny plain-XLA transpose so the source-side el stream is lane-major
    el_t = jnp.transpose(el)                                     # [H, N_pad]
    # 2) online-softmax attention / aggregation pass
    return gat_attend(z, el_t, er, adj_i8, n_heads=n_heads, f_out=f_out,
                      negative_slope=negative_slope, apply_act=apply_act,
                      tq=tq, tk=tk, use_bf16=use_bf16, out_dtype=out_dtype)


def sce_loss(x_rec, x_init, *, alpha):
    kernel = functools.partial(sce_loss_kernel, alpha=alpha)
    out = pl.pallas_call(
        kernel,
        out_shape=jax.ShapeDtypeStruct((1, 1), jnp.float32),
        in_specs=[pl.BlockSpec(x_rec.shape, lambda *_: (0, 0)),
                  pl.BlockSpec(x_init.shape, lambda *_: (0, 0))],
        out_specs=pl.BlockSpec((1, 1), lambda *_: (0, 0)),
    )(x_rec, x_init)
    return out[0, 0]


def edge_bce_loss(src_feat, dst_feat, y, efc, *, negative_slope, pair_tile,
                  use_bf16):
    P, D = src_feat.shape
    tp = max(16, _pow2_floor(min(pair_tile, P)))
    p_pad = _round_up(P, tp)
    if p_pad != P:
        src_feat = jnp.pad(src_feat, ((0, p_pad - P), (0, 0)))
        dst_feat = jnp.pad(dst_feat, ((0, p_pad - P), (0, 0)))
        y = jnp.pad(y, ((0, p_pad - P), (0, 0)))
    w1a, w1b = efc['w1'][:D], efc['w1'][D:]
    kernel = functools.partial(edge_bce_kernel, negative_slope=negative_slope,
                               n_rows=int(P), use_bf16=use_bf16)
    out = pl.pallas_call(
        kernel,
        out_shape=jax.ShapeDtypeStruct((1, 1), jnp.float32),
        grid=(p_pad // tp,),
        in_specs=[pl.BlockSpec((tp, D), lambda i: (i, 0)),
                  pl.BlockSpec((tp, D), lambda i: (i, 0)),
                  pl.BlockSpec(w1a.shape, lambda i: (0, 0)),
                  pl.BlockSpec(w1b.shape, lambda i: (0, 0)),
                  pl.BlockSpec(efc['b1'].shape, lambda i: (0, 0)),
                  pl.BlockSpec(efc['w2'].shape, lambda i: (0, 0)),
                  pl.BlockSpec(efc['b2'].shape, lambda i: (0, 0)),
                  pl.BlockSpec((tp, 1), lambda i: (i, 0))],
        out_specs=pl.BlockSpec((1, 1), lambda i: (0, 0)),        # accumulator
        compiler_params=pltpu.CompilerParams(
            dimension_semantics=("arbitrary",), vmem_limit_bytes=_VMEM_LIMIT),
    )(src_feat, dst_feat, w1a, w1b, efc['b1'], efc['w2'], efc['b2'], y)
    return out[0, 0]


# ----------------------------------------------------------------------------
# Parameters (deterministic init mirroring __init__ shapes)
# ----------------------------------------------------------------------------
def xavier_uniform(key, shape):
    bound = math.sqrt(6.0 / (shape[0] + shape[1]))
    return jax.random.uniform(key, shape, jnp.float32, -bound, bound)


def init_params(key, n_dim, hidden_dim, n_layers, n_heads):
    assert hidden_dim % n_heads == 0
    f = hidden_dim // n_heads
    keys = iter(jax.random.split(key, 32))
    enc = []
    in_dim = n_dim
    for _ in range(n_layers):
        enc.append(dict(w=xavier_uniform(next(keys), (in_dim, n_heads * f)),
                        a_src=xavier_uniform(next(keys), (n_heads, f)),
                        a_dst=xavier_uniform(next(keys), (n_heads, f))))
        in_dim = n_heads * f
    dec = dict(w=xavier_uniform(next(keys), (hidden_dim, 1 * n_dim)),
               a_src=xavier_uniform(next(keys), (1, n_dim)),
               a_dst=xavier_uniform(next(keys), (1, n_dim)))
    return dict(
        encoder=enc,
        decoder=dec,
        enc2dec_w=xavier_uniform(next(keys), (hidden_dim * n_layers, hidden_dim)),
        edge_fc=dict(
            w1=xavier_uniform(next(keys), (hidden_dim * n_layers * 2, hidden_dim)),
            b1=jnp.zeros((1, hidden_dim), jnp.float32),
            w2=xavier_uniform(next(keys), (hidden_dim, 1)),
            b2=jnp.zeros((1, 1), jnp.float32)),
        enc_mask_token=jnp.zeros((1, n_dim), jnp.float32),
    )


# ----------------------------------------------------------------------------
# GMAEModel.compute_loss forward
# ----------------------------------------------------------------------------
def compute_loss(params, x, adj, edges_src, edges_dst, *, mask_rate, n_heads,
                 hidden_dim, n_layers, negative_slope, alpha_l, key,
                 row_tile=512, src_tile=512, pair_tile=512, use_bf16=True):
    # NOTE: on v5e (no bf16 VPU) prefer use_bf16=False for the GAT layers.
    N, n_dim = x.shape
    f = hidden_dim // n_heads
    k_perm, k_pos, k_neg_src, k_neg_dst = jax.random.split(key, 4)

    # --- encoding_mask_noise --------------------------------------------------
    perm = jax.random.permutation(k_perm, N)
    num_mask = int(mask_rate * N)
    mask_nodes = perm[:num_mask]
    x_masked = x.at[mask_nodes].set(params['enc_mask_token'][0])

    # --- tiling / padding -----------------------------------------------------
    n_pad, tq, tk = _pick_tiles(N, row_tile, src_tile)
    pad = n_pad - N
    adj_i8 = adj.astype(jnp.int8)
    if pad:
        x_masked = jnp.pad(x_masked, ((0, pad), (0, 0)))
        adj_i8 = jnp.pad(adj_i8, ((0, pad), (0, pad)))   # padded src cols masked

    act_dt = jnp.bfloat16 if use_bf16 else jnp.float32

    # --- encoder GAT (n_layers, concat heads, relu, return_hidden=True) -------
    h = x_masked
    all_hidden = []
    for layer in range(n_layers):
        p = params['encoder'][layer]
        a_src_k, a_dst_k = fold_attn_cols(p['w'], p['a_src'], p['a_dst'],
                                          n_heads, f)
        h = gat_layer(h, adj_i8, p['w'], a_src_k, a_dst_k,
                      n_heads=n_heads, f_out=f, negative_slope=negative_slope,
                      apply_act=True, tq=tq, tk=tk, use_bf16=use_bf16,
                      out_dtype=act_dt)
        all_hidden.append(h)
    enc_rep = jnp.concatenate(all_hidden, axis=1)            # [N_pad, hidden*L]

    # --- encoder_to_decoder folded into the decoder GAT (exact algebra) -------
    dec = params['decoder']
    w_dec_c = params['enc2dec_w'] @ dec['w']                 # [hidden*L, n_dim]
    a_src_dec, a_dst_dec = fold_attn_cols(w_dec_c, dec['a_src'], dec['a_dst'],
                                          1, n_dim)
    recon = gat_layer(enc_rep, adj_i8, w_dec_c, a_src_dec, a_dst_dec,
                      n_heads=1, f_out=n_dim, negative_slope=negative_slope,
                      apply_act=False, tq=tq, tk=tk, use_bf16=use_bf16,
                      out_dtype=jnp.float32)

    # --- SCE reconstruction loss on masked nodes ------------------------------
    x_init = jnp.take(x, mask_nodes, axis=0)
    x_rec = jnp.take(recon[:N], mask_nodes, axis=0)
    sce = sce_loss(x_rec, x_init, alpha=alpha_l)

    # --- edge reconstruction BCE loss ------------------------------------------
    E = int(edges_src.shape[0])
    threshold = min(10000, N)
    pos_idx = jax.random.choice(k_pos, E, (threshold,), replace=(threshold > E))
    pos_src = jnp.take(edges_src, pos_idx)
    pos_dst = jnp.take(edges_dst, pos_idx)
    neg_src = jax.random.randint(k_neg_src, (threshold,), 0, N, dtype=jnp.int32)
    neg_dst = jax.random.randint(k_neg_dst, (threshold,), 0, N, dtype=jnp.int32)
    src_idx = jnp.concatenate([pos_src, neg_src])
    dst_idx = jnp.concatenate([pos_dst, neg_dst])
    src_feat = jnp.take(enc_rep, src_idx, axis=0)            # [2T, hid*L]
    dst_feat = jnp.take(enc_rep, dst_idx, axis=0)
    y = jnp.concatenate([jnp.ones((threshold, 1), jnp.float32),
                         jnp.zeros((threshold, 1), jnp.float32)], axis=0)
    bce = edge_bce_loss(src_feat, dst_feat, y, params['edge_fc'],
                        negative_slope=negative_slope, pair_tile=pair_tile,
                        use_bf16=use_bf16)

    return sce + bce


# ----------------------------------------------------------------------------
if __name__ == "__main__":
    n_dim, e_dim, hidden_dim, n_layers, n_heads = 8, 4, 32, 2, 4
    negative_slope, mask_rate, alpha_l = 0.2, 0.5, 2
    N = 256   # small demo graph; large enough to exercise both grid axes

    key = jax.random.PRNGKey(0)
    k_feat, k_param, k_fwd = jax.random.split(key, 3)

    x = jax.random.normal(k_feat, (N, n_dim), jnp.float32)
    # ring + chord graph: E = 2N directed edges
    idx = jnp.arange(N, dtype=jnp.int32)
    src = jnp.concatenate([idx, idx])
    dst = jnp.concatenate([(idx + 1) % N, (idx + 5) % N])
    adj = jnp.zeros((N, N), jnp.int8).at[dst, src].set(1)
    adj = adj.at[idx, idx].set(1)                            # self-loops

    params = init_params(k_param, n_dim, hidden_dim, n_layers, n_heads)

    # tiles chosen so the dst-row, src-tile and pair-tile grids are all > 1
    loss = compute_loss(params, x, adj, src, dst,
                        mask_rate=mask_rate, n_heads=n_heads,
                        hidden_dim=hidden_dim, n_layers=n_layers,
                        negative_slope=negative_slope, alpha_l=alpha_l,
                        key=k_fwd, row_tile=64, src_tile=128, pair_tile=128,
                        use_bf16=True)
    jax.block_until_ready(loss)
    assert loss.shape == () and bool(jnp.isfinite(loss))
    print("KERNEL_OK")
</pallas_src>

<mosaic_0001>
module attributes {stable_mosaic.version = 11 : i64} {
  func.func @gat_project_kernel(%arg0: i32, %arg1: memref<64x8xf32, #tpu.memory_space<vmem>>, %arg2: memref<8x32xf32, #tpu.memory_space<vmem>>, %arg3: memref<8x4xf32, #tpu.memory_space<vmem>>, %arg4: memref<8x4xf32, #tpu.memory_space<vmem>>, %arg5: memref<64x32xbf16, #tpu.memory_space<vmem>>, %arg6: memref<64x4xf32, #tpu.memory_space<vmem>>, %arg7: memref<64x4xf32, #tpu.memory_space<vmem>>) attributes {dimension_semantics = [#tpu.dimension_semantics<parallel>], iteration_bounds = array<i64: 4>, scalar_prefetch = 0 : i64, scratch_operands = 0 : i64, tpu.core_type = #tpu.core_type<tc>, window_params = [{transform_indices = @transform_0, window_bounds = array<i64: 64, 8>}, {pipeline_mode = #tpu.pipeline_mode<synchronous>, transform_indices = @transform_1, window_bounds = array<i64: 8, 32>}, {pipeline_mode = #tpu.pipeline_mode<synchronous>, transform_indices = @transform_2, window_bounds = array<i64: 8, 4>}, {pipeline_mode = #tpu.pipeline_mode<synchronous>, transform_indices = @transform_3, window_bounds = array<i64: 8, 4>}, {transform_indices = @transform_4, window_bounds = array<i64: 64, 32>}, {transform_indices = @transform_5, window_bounds = array<i64: 64, 4>}, {transform_indices = @transform_6, window_bounds = array<i64: 64, 4>}]} {
    %c0 = arith.constant 0 : index
    %c0_0 = arith.constant 0 : index
    %0 = vector.load %arg1[%c0, %c0_0] : memref<64x8xf32, #tpu.memory_space<vmem>>, vector<64x8xf32>
    %1 = arith.truncf %0 : vector<64x8xf32> to vector<64x8xbf16>
    %c0_1 = arith.constant 0 : index
    %c0_2 = arith.constant 0 : index
    %2 = vector.load %arg2[%c0_1, %c0_2] : memref<8x32xf32, #tpu.memory_space<vmem>>, vector<8x32xf32>
    %3 = arith.truncf %2 : vector<8x32xf32> to vector<8x32xbf16>
    %cst = arith.constant dense<0.000000e+00> : vector<64x32xf32>
    %4 = tpu.matmul %1, %3, %cst {dimension_numbers = #tpu.dot_dimension_numbers<[1], [0], [0], [1], [0, 0, 1, 1], [], []>} : vector<64x8xbf16>, vector<8x32xbf16>, vector<64x32xf32> -> vector<64x32xf32>
    %5 = arith.truncf %4 : vector<64x32xf32> to vector<64x32xbf16>
    %c0_3 = arith.constant 0 : index
    %c0_4 = arith.constant 0 : index
    %6 = vector.load %arg5[%c0_3, %c0_4] : memref<64x32xbf16, #tpu.memory_space<vmem>>, vector<64x32xbf16>
    tpu.vector_store %arg5[%c0_3, %c0_4], %5 {strides = array<i32>} : memref<64x32xbf16, #tpu.memory_space<vmem>>, vector<64x32xbf16>,
    %c0_5 = arith.constant 0 : index
    %c0_6 = arith.constant 0 : index
    %7 = vector.load %arg3[%c0_5, %c0_6] : memref<8x4xf32, #tpu.memory_space<vmem>>, vector<8x4xf32>
    %8 = arith.truncf %7 : vector<8x4xf32> to vector<8x4xbf16>
    %cst_7 = arith.constant dense<0.000000e+00> : vector<64x4xf32>
    %9 = tpu.matmul %1, %8, %cst_7 {dimension_numbers = #tpu.dot_dimension_numbers<[1], [0], [0], [1], [0, 0, 1, 1], [], []>} : vector<64x8xbf16>, vector<8x4xbf16>, vector<64x4xf32> -> vector<64x4xf32>
    %c0_8 = arith.constant 0 : index
    %c0_9 = arith.constant 0 : index
    %10 = vector.load %arg6[%c0_8, %c0_9] : memref<64x4xf32, #tpu.memory_space<vmem>>, vector<64x4xf32>
    tpu.vector_store %arg6[%c0_8, %c0_9], %9 {strides = array<i32>} : memref<64x4xf32, #tpu.memory_space<vmem>>, vector<64x4xf32>,
    %c0_10 = arith.constant 0 : index
    %c0_11 = arith.constant 0 : index
    %11 = vector.load %arg4[%c0_10, %c0_11] : memref<8x4xf32, #tpu.memory_space<vmem>>, vector<8x4xf32>
    %12 = arith.truncf %11 : vector<8x4xf32> to vector<8x4xbf16>
    %cst_12 = arith.constant dense<0.000000e+00> : vector<64x4xf32>
    %13 = tpu.matmul %1, %12, %cst_12 {dimension_numbers = #tpu.dot_dimension_numbers<[1], [0], [0], [1], [0, 0, 1, 1], [], []>} : vector<64x8xbf16>, vector<8x4xbf16>, vector<64x4xf32> -> vector<64x4xf32>
    %c0_13 = arith.constant 0 : index
    %c0_14 = arith.constant 0 : index
    %14 = vector.load %arg7[%c0_13, %c0_14] : memref<64x4xf32, #tpu.memory_space<vmem>>, vector<64x4xf32>
    tpu.vector_store %arg7[%c0_13, %c0_14], %13 {strides = array<i32>} : memref<64x4xf32, #tpu.memory_space<vmem>>, vector<64x4xf32>,
    return
  }
  func.func @transform_0(%arg0: i32) -> (i32, i32) {
    %c0_i32 = arith.constant 0 : i32
    %c0_i32_0 = arith.constant 0 : i32
    return %arg0, %c0_i32 : i32, i32
  }
  func.func @transform_1(%arg0: i32) -> (i32, i32) {
    %c0_i32 = arith.constant 0 : i32
    %c0_i32_0 = arith.constant 0 : i32
    %c0_i32_1 = arith.constant 0 : i32
    return %c0_i32, %c0_i32_0 : i32, i32
  }
  func.func @transform_2(%arg0: i32) -> (i32, i32) {
    %c0_i32 = arith.constant 0 : i32
    %c0_i32_0 = arith.constant 0 : i32
    %c0_i32_1 = arith.constant 0 : i32
    return %c0_i32, %c0_i32_0 : i32, i32
  }
  func.func @transform_3(%arg0: i32) -> (i32, i32) {
    %c0_i32 = arith.constant 0 : i32
    %c0_i32_0 = arith.constant 0 : i32
    %c0_i32_1 = arith.constant 0 : i32
    return %c0_i32, %c0_i32_0 : i32, i32
  }
  func.func @transform_4(%arg0: i32) -> (i32, i32) {
    %c0_i32 = arith.constant 0 : i32
    %c0_i32_0 = arith.constant 0 : i32
    return %arg0, %c0_i32 : i32, i32
  }
  func.func @transform_5(%arg0: i32) -> (i32, i32) {
    %c0_i32 = arith.constant 0 : i32
    %c0_i32_0 = arith.constant 0 : i32
    return %arg0, %c0_i32 : i32, i32
  }
  func.func @transform_6(%arg0: i32) -> (i32, i32) {
    %c0_i32 = arith.constant 0 : i32
    %c0_i32_0 = arith.constant 0 : i32
    return %arg0, %c0_i32 : i32, i32
  }
}

</mosaic_0001>

<bundles_post_ra>
// kernel: tpu_custom_call.1
= control target key start
LH: loop header
LB: loop body
LE: loop exit
PB: predicated region body
PF: predicated region fallthrough
CT: control target
= control target key end

     0   :  { %s650_s21 = smov 0   ;;  %s757_s0 = inlined_call_operand.vmem [shape: f32[256,8], index: 0, kind: input, shape index: {}]   ;;  %s758_s1 = inlined_call_operand.vmem [shape: f32[8,32], index: 1, kind: input, shape index: {}]   ;;  %s759_s2 = inlined_call_operand.vmem [shape: f32[8,4], index: 2, kind: input, shape index: {}]   ;;  %s760_s3 = inlined_call_operand.vmem [shape: f32[8,4], index: 3, kind: input, shape index: {}]   ;;  %s761_s4 = inlined_call_operand.vmem [shape: bf16[256,32], index: 4, kind: output, shape index: {0}]   ;;  %s762_s5 = inlined_call_operand.vmem [shape: f32[256,4], index: 5, kind: output, shape index: {1}]   ;;  %s763_s6 = inlined_call_operand.vmem [shape: f32[256,4], index: 6, kind: output, shape index: {2}]  }
   0x1 LB: > { %s569_s22 = sadd.s32 4294967295, %s613_s21   ;;  %p573_p0 = scmp.ge.s32.totalorder %s613_s21, 1  ;;  %s613_s21 = sphi %s650_s21, %s17_s21  }
   0x2   : > { %p218_p1 = scmp.lt.s32.totalorder %s613_s21, 5 }
   0x4   : > { %p219_p2 = pnand %p573_p0, %p218_p1 }
   0x5   : > { %s574_s29 = sshll.u32 (!%p219_p2), %s569_s22, 3 }
   0x6   : > { %222 = sbr.rel (%p219_p2) target bundleno = 194 (0xc2), region = 36  ;;  %p259_p3 = scmp.lt.s32.totalorder (!%p219_p2), %s574_s29, 31 }
   0xb   : > { %v295_v0 = vld [vmem:[%s758_s1] sm:$0xff]  ;;  %vm310_vm0 = vcmask 1043456   ;;  %s765_s29 = smov (!%p259_p3, %s574_s29), 31  ;;  %vm297_vm1 = vcmask 64512   ;;  %vm394_vm2 = vcmask 31744   ;;  %vm351_vm3 = vcmask 257024  }
   0xc   : > { %v360_v1 = vld [vmem:[%s759_s2] sm:$0xff]  ;;  %v296_v3 = vpack.c.bf16 %v295_v0, %v295_v0  ;;  %s670_s30 = sshll.u32 %s765_s29, 3  ;;  %s577_s10 = sshll.u32 %s765_s29, 2 }
   0xd   : > { %v403_v2 = vld [vmem:[%s760_s3] sm:$0xff]  ;;  %v361_v4 = vpack.c.bf16 %v360_v1, %v360_v1  ;;  %s262_s9 = scalar_lea.vmem %s757_s0, %s670_s30  ;;  %s693_s13 = scalar_lea.vmem %s762_s5, %s670_s30 }
   0xe   : > { %v404_v5 = vpack.c.bf16 %v403_v2, %v403_v2  ;;  %v312_v6 = vsel %vm310_vm0, %v296_v3, 0  ;;  %v283_v9 = vld [vmem:[%s262_s9] sm:$0xff]  ;;  %v284_v10 = vld [vmem:[%s262_s9 + $0x8] sm:$0xff]  ;;  %v285_v11 = vld [vmem:[%s262_s9 + $0x10] sm:$0xff]  ;;  %s698_s16 = scalar_lea.vmem %s761_s4, %s577_s10  ;;  %s708_s19 = scalar_lea.vmem %s763_s6, %s670_s30 }
   0xf   : > { %v363_v7 = vsel %vm310_vm0, %v361_v4, 0  ;;  %321 = vmatpush.bf16.msra.mxu0 %v312_v6  ;;  %596 = vmatpush.bf16.msra.mxu3 %v312_v6  ;;  %v291_v12 = vpack.c.bf16 %v284_v10, %v283_v9  ;;  %v286_v13 = vld [vmem:[%s262_s9 + $0x18] sm:$0xff]  ;;  %v287_v15 = vld [vmem:[%s262_s9 + $0x20] sm:$0xff]  ;;  %v288_v16 = vld [vmem:[%s262_s9 + $0x28] sm:$0xff] }
  0x10   : > { %v406_v8 = vsel %vm310_vm0, %v404_v5, 0  ;;  %597 = vmatpush.bf16.msra.mxu1 %v363_v7  ;;  %v292_v14 = vpack.c.bf16 %v286_v13, %v285_v11  ;;  %v293_v17 = vpack.c.bf16 %v288_v16, %v287_v15  ;;  %v289_v18 = vld [vmem:[%s262_s9 + $0x30] sm:$0xff]  ;;  %v290_v19 = vld [vmem:[%s262_s9 + $0x38] sm:$0xff] }
  0x11   : > { %598 = vmatpush.bf16.msra.mxu2 %v406_v8  ;;  %v294_v20 = vpack.c.bf16 %v290_v19, %v289_v18 }
  0x12   : > { %582 = vmatmul.msk.bf16.vlgmr.msra.gmra.mxu0 %vm297_vm1, %v291_v12  ;;  %583 = vmatmul.msk.bf16.vlgmr.msra.gmra.mxu3 %vm297_vm1, %v292_v14 }
  0x13   : > { %372 = vmatpush.bf16.msrb.mxu0 %v363_v7  ;;  %587 = vmatmul.msk.bf16.vlgmr.msra.gmra.mxu1 %vm297_vm1, %v292_v14 }
  0x14   : > { %591 = vmatmul.msk.bf16.vlgmr.msra.gmra.mxu2 %vm297_vm1, %v292_v14 }
  0x17   : > { %415 = vmatpush.bf16.msra.mxu0 %v406_v8 }
  0x22   : > { %586 = vmatmul.msk.bf16.vlgmr.msrb.gmra.mxu0 %vm297_vm1, %v291_v12  ;;  %584 = vmatmul.msk.bf16.gmra.mxu3 %vm297_vm1, %v293_v17 }
  0x23   : > { %588 = vmatmul.msk.bf16.gmra.mxu1 %vm297_vm1, %v293_v17 }
  0x24   : > { %592 = vmatmul.msk.bf16.gmra.mxu2 %vm297_vm1, %v293_v17 }
  0x32   : > { %590 = vmatmul.msk.bf16.vlgmr.msra.gmra.mxu0 %vm297_vm1, %v291_v12  ;;  %585 = vmatmul.msk.bf16.gmra.mxu3 %vm297_vm1, %v294_v20 }
  0x33   : > { %589 = vmatmul.msk.bf16.gmra.mxu1 %vm297_vm1, %v294_v20 }
  0x34   : > { %593 = vmatmul.msk.bf16.gmra.mxu2 %vm297_vm1, %v294_v20 }
  0x8f   : > { %v323_v21 = vpop.f32.mrf.mxu0 }
  0x90   : > { %v343_v22 = vpack.c.bf16 %v323_v21, %v323_v21  ;;  %v379_v23 = vpop.f32.mrf.mxu1 }
  0x91   : > { %397 = vst.msk [vmem:[%s693_s13 + $0x10] sm:$0xff] %vm394_vm2, %v379_v23 }
  0x92   : > { %352 = vst.msk [vmem:[%s698_s16] sm:$0xf] %vm351_vm3, %v343_v22 }
  0x95   : > { %v328_v24 = vpop.f32.mrf.mxu3 }
  0x96   : > { %v345_v25 = vpack.c.bf16 %v328_v24, %v328_v24 }
  0x97   : > { %v422_v26 = vpop.f32.mrf.mxu2  ;;  %v325_v27 = vpop.f32.mrf.mxu0 }
  0x98   : > { %439 = vst.msk [vmem:[%s708_s19 + $0x10] sm:$0xff] %vm394_vm2, %v422_v26  ;;  %v344_v28 = vpack.c.bf16 %v325_v27, %v325_v27  ;;  %v381_v29 = vpop.f32.mrf.mxu1 }
  0x99   : > { %354 = vst.msk [vmem:[%s698_s16 + $0x8] sm:$0xf] %vm351_vm3, %v345_v25 }
  0x9a   : > { %353 = vst.msk [vmem:[%s698_s16 + $0x4] sm:$0xf] %vm351_vm3, %v344_v28 }
  0x9b   : > { %398 = vst.msk [vmem:[%s693_s13 + $0x18] sm:$0xff] %vm394_vm2, %v381_v29 }
  0x9d   : > { %v330_v30 = vpop.f32.mrf.mxu3 }
  0x9e   : > { %v346_v31 = vpack.c.bf16 %v330_v30, %v330_v30 }
  0x9f   : > { %v424_v32 = vpop.f32.mrf.mxu2  ;;  %v374_v33 = vpop.f32.mrf.mxu0 }
  0xa0   : > { %440 = vst.msk [vmem:[%s708_s19 + $0x18] sm:$0xff] %vm394_vm2, %v424_v32  ;;  %v384_v34 = vpop.f32.mrf.mxu1 }
  0xa1   : > { %355 = vst.msk [vmem:[%s698_s16 + $0xc] sm:$0xf] %vm351_vm3, %v346_v31 }
  0xa2   : > { %395 = vst.msk [vmem:[%s693_s13] sm:$0xff] %vm394_vm2, %v374_v33 }
  0xa3   : > { %399 = vst.msk [vmem:[%s693_s13 + $0x20] sm:$0xff] %vm394_vm2, %v384_v34 }
  0xa5   : > { %v333_v35 = vpop.f32.mrf.mxu3 }
  0xa6   : > { %v347_v36 = vpack.c.bf16 %v333_v35, %v333_v35 }
  0xa7   : > { %v427_v37 = vpop.f32.mrf.mxu2  ;;  %v376_v38 = vpop.f32.mrf.mxu0 }
  0xa8   : > { %441 = vst.msk [vmem:[%s708_s19 + $0x20] sm:$0xff] %vm394_vm2, %v427_v37  ;;  %v386_v39 = vpop.f32.mrf.mxu1 }
  0xa9   : > { %356 = vst.msk [vmem:[%s698_s16 + $0x10] sm:$0xf] %vm351_vm3, %v347_v36 }
  0xaa   : > { %396 = vst.msk [vmem:[%s693_s13 + $0x8] sm:$0xff] %vm394_vm2, %v376_v38 }
  0xab   : > { %400 = vst.msk [vmem:[%s693_s13 + $0x28] sm:$0xff] %vm394_vm2, %v386_v39 }
  0xad   : > { %v335_v40 = vpop.f32.mrf.mxu3 }
  0xae   : > { %v348_v41 = vpack.c.bf16 %v335_v40, %v335_v40 }
  0xaf   : > { %v429_v42 = vpop.f32.mrf.mxu2  ;;  %v417_v43 = vpop.f32.mrf.mxu0 }
  0xb0   : > { %442 = vst.msk [vmem:[%s708_s19 + $0x28] sm:$0xff] %vm394_vm2, %v429_v42  ;;  %v389_v44 = vpop.f32.mrf.mxu1 }
  0xb1   : > { %357 = vst.msk [vmem:[%s698_s16 + $0x14] sm:$0xf] %vm351_vm3, %v348_v41 }
  0xb2   : > { %401 = vst.msk [vmem:[%s693_s13 + $0x30] sm:$0xff] %vm394_vm2, %v389_v44 }
  0xb3   : > { %437 = vst.msk [vmem:[%s708_s19] sm:$0xff] %vm394_vm2, %v417_v43 }
  0xb5   : > { %v338_v45 = vpop.f32.mrf.mxu3 }
  0xb6   : > { %v349_v46 = vpack.c.bf16 %v338_v45, %v338_v45 }
  0xb7   : > { %v432_v47 = vpop.f32.mrf.mxu2  ;;  %v419_v49 = vpop.f32.mrf.mxu0 }
  0xb8   : > { %443 = vst.msk [vmem:[%s708_s19 + $0x30] sm:$0xff] %vm394_vm2, %v432_v47  ;;  %v391_v48 = vpop.f32.mrf.mxu1 }
  0xb9   : > { %358 = vst.msk [vmem:[%s698_s16 + $0x18] sm:$0xf] %vm351_vm3, %v349_v46 }
  0xba   : > { %402 = vst.msk [vmem:[%s693_s13 + $0x38] sm:$0xff] %vm394_vm2, %v391_v48 }
  0xbb   : > { %438 = vst.msk [vmem:[%s708_s19 + $0x8] sm:$0xff] %vm394_vm2, %v419_v49 }
  0xbd   : > { %v340_v50 = vpop.f32.mrf.mxu3 }
  0xbe   : > { %v350_v51 = vpack.c.bf16 %v340_v50, %v340_v50 }
  0xbf   : > { %v434_v52 = vpop.f32.mrf.mxu2 }
  0xc0   : > { %444 = vst.msk [vmem:[%s708_s19 + $0x38] sm:$0xff] %vm394_vm2, %v434_v52 }
  0xc1   : > { %359 = vst.msk [vmem:[%s698_s16 + $0x1c] sm:$0xf] %vm351_vm3, %v350_v51 }
  0xc2 PF: > { %s17_s21 = sadd.s32 1, %s613_s21  }
  0xc3   : > { %p14_p4 = scmp.ge.s32.totalorder %s17_s21, 6  }
  0xc5   :  { %16 = sbr.rel (!%p14_p4) target bundleno = 1 (0x1), region = 90 }

</bundles_post_ra>
